<compile_context>
chip_gen: v6e
topology: v6e:2x2x1
jax: 0.10.0
libtpu: 0.0.40
codegen_flags: <defaults>
</compile_context>

<pallas_src>
import jax
import jax.numpy as jnp
from jax.experimental import pallas as pl
from jax.experimental.pallas import tpu as pltpu


def _mult_kernel(x_ref, w_ref, b_ref, o_ref):
    # x_ref: (N, 1, L), w_ref/b_ref: (1, T, L), o_ref: (N, T, L) with L = C*S*S
    # Broadcasted fused multiply-add: out[n, t, :] = x[n, 0, :] * w[0, t, :] + b[0, t, :]
    o_ref[...] = x_ref[...] * w_ref[...] + b_ref[...]


def mult_forward(x, weights, bias):
    """x: (N, C, S, S); weights, bias: (T, C, S, S) -> (N, T*C, S, S)."""
    N, C, S, _ = x.shape
    T = weights.shape[0]
    L = C * S * S  # lane-dense last dim (multiple of 128 for C=4, S=16 -> 1024)

    # Pure reshapes on contiguous arrays (no data movement).
    x2 = x.reshape(N, 1, L)
    w2 = weights.reshape(1, T, L)
    b2 = bias.reshape(1, T, L)

    # Single invocation (no grid): whole operands live in VMEM (tiny footprint).
    out3 = pl.pallas_call(
        _mult_kernel,
        out_shape=jax.ShapeDtypeStruct((N, T, L), x.dtype),
        in_specs=[
            pl.BlockSpec(memory_space=pltpu.MemorySpace.VMEM),
            pl.BlockSpec(memory_space=pltpu.MemorySpace.VMEM),
            pl.BlockSpec(memory_space=pltpu.MemorySpace.VMEM),
        ],
        out_specs=pl.BlockSpec(memory_space=pltpu.MemorySpace.VMEM),
    )(x2, w2, b2)

    # (N, T, C*S*S) -> (N, T*C, S, S): contiguous reshape; index t*C + c matches
    # torch.cat([x*w[0]+b[0], ..., x*w[T-1]+b[T-1]], dim=1).
    return out3.reshape(N, T * C, S, S)


if __name__ == "__main__":
    # Small shapes consistent with the module: Mult(channels=4, size=16, times=3)
    N, C, S, T = 2, 4, 16, 3

    key = jax.random.PRNGKey(0)
    kx, kw, kb = jax.random.split(key, 3)

    x = jax.random.normal(kx, (N, C, S, S), dtype=jnp.float32)
    # weights ~ Normal(0, 0.1) as in torch.nn.init.normal_(std=0.1)
    weights = 0.1 * jax.random.normal(kw, (T, C, S, S), dtype=jnp.float32)
    # bias is left uninitialized in the PyTorch module; use deterministic values here
    bias = 0.1 * jax.random.normal(kb, (T, C, S, S), dtype=jnp.float32)

    out = mult_forward(x, weights, bias)
    out = jax.block_until_ready(out)

    # Reference check against plain JAX (same semantics as the torch module)
    ref = jnp.concatenate([x * weights[t] + bias[t] for t in range(T)], axis=1)
    assert out.shape == (N, T * C, S, S)
    assert jnp.allclose(out, ref, atol=1e-6), "mismatch vs reference"

    print("KERNEL_OK")
</pallas_src>

<mosaic_0001>
module attributes {stable_mosaic.version = 11 : i64} {
  func.func @_mult_kernel(%arg0: memref<2x1x1024xf32, #tpu.memory_space<vmem>>, %arg1: memref<1x3x1024xf32, #tpu.memory_space<vmem>>, %arg2: memref<1x3x1024xf32, #tpu.memory_space<vmem>>, %arg3: memref<2x3x1024xf32, #tpu.memory_space<vmem>>) attributes {dimension_semantics = [], scalar_prefetch = 0 : i64, scratch_operands = 0 : i64, tpu.core_type = #tpu.core_type<tc>} {
    %c0 = arith.constant 0 : index
    %c0_0 = arith.constant 0 : index
    %c0_1 = arith.constant 0 : index
    %0 = vector.load %arg0[%c0, %c0_0, %c0_1] : memref<2x1x1024xf32, #tpu.memory_space<vmem>>, vector<2x1x1024xf32>
    %c0_2 = arith.constant 0 : index
    %c0_3 = arith.constant 0 : index
    %c0_4 = arith.constant 0 : index
    %1 = vector.load %arg1[%c0_2, %c0_3, %c0_4] : memref<1x3x1024xf32, #tpu.memory_space<vmem>>, vector<1x3x1024xf32>
    %2 = vector.broadcast %0 : vector<2x1x1024xf32> to vector<2x3x1024xf32>
    %3 = vector.broadcast %1 : vector<1x3x1024xf32> to vector<2x3x1024xf32>
    %4 = arith.mulf %2, %3 : vector<2x3x1024xf32>
    %c0_5 = arith.constant 0 : index
    %c0_6 = arith.constant 0 : index
    %c0_7 = arith.constant 0 : index
    %5 = vector.load %arg2[%c0_5, %c0_6, %c0_7] : memref<1x3x1024xf32, #tpu.memory_space<vmem>>, vector<1x3x1024xf32>
    %6 = vector.broadcast %5 : vector<1x3x1024xf32> to vector<2x3x1024xf32>
    %7 = arith.addf %4, %6 : vector<2x3x1024xf32>
    %c0_8 = arith.constant 0 : index
    %c0_9 = arith.constant 0 : index
    %c0_10 = arith.constant 0 : index
    %8 = vector.load %arg3[%c0_8, %c0_9, %c0_10] : memref<2x3x1024xf32, #tpu.memory_space<vmem>>, vector<2x3x1024xf32>
    tpu.vector_store %arg3[%c0_8, %c0_9, %c0_10], %7 {strides = array<i32>} : memref<2x3x1024xf32, #tpu.memory_space<vmem>>, vector<2x3x1024xf32>,
    return
  }
}

</mosaic_0001>

<bundles_post_ra>
// kernel: tpu_custom_call.1
= control target key start
LH: loop header
LB: loop body
LE: loop exit
PB: predicated region body
PF: predicated region fallthrough
CT: control target
= control target key end

     0   :  { %v22_v0 = vlaneseq  ;;  %s330_s0 = inlined_call_operand.vmem [shape: f32[2,1,1024], index: 0, kind: input, shape index: {}]   ;;  %s331_s1 = inlined_call_operand.vmem [shape: f32[1,3,1024], index: 1, kind: input, shape index: {}]   ;;  %s332_s2 = inlined_call_operand.vmem [shape: f32[1,3,1024], index: 2, kind: input, shape index: {}]   ;;  %s333_s3 = inlined_call_operand.vmem [shape: f32[2,3,1024], index: 3, kind: output, shape index: {}]  }
   0x1   :  { %v16_v1 = vld [vmem:[%s331_s1] sm:$0x77]  ;;  %v247_v4 = vld [vmem:[%s331_s1 + $0x8] sm:$0x77]  ;;  %v18_v11 = vld [vmem:[%s331_s1 + $0x10] sm:$0x77] }
   0x2   :  { %v240_v2 = vld [vmem:[%s332_s2] sm:$0x77]  ;;  %v242_v3 = vshrl.u32 %v22_v0, 7  ;;  %v252_v5 = vld [vmem:[%s332_s2 + $0x8] sm:$0x77]  ;;  %v106_v7 = vcombine.high %v16_v1, %v16_v1  ;;  %v107_v9 = vcombine.high %v247_v4, %v247_v4  ;;  %v108_v19 = vcombine.high %v18_v11, %v18_v11 }
   0x3   :  { %v14_v6 = vld [vmem:[%s330_s0] sm:$0xff]  ;;  %v259_v8 = vcombine.high %v240_v2, %v240_v2  ;;  %v265_v10 = vcombine.high %v252_v5, %v252_v5  ;;  %v273_v12 = vld [vmem:[%s332_s2 + $0x10] sm:$0x77]  ;;  %v19_v33 = vld [vmem:[%s331_s1 + $0x18] sm:$0x77] }
   0x4   :  { %v24_v13 = vsub.s32 0, %v242_v3  ;;  %v28_v14 = vsub.s32 1, %v242_v3  ;;  %v32_v15 = vsub.s32 2, %v242_v3  ;;  %v36_v16 = vsub.s32 3, %v242_v3  ;;  %v133_v38 = vld [vmem:[%s332_s2 + $0x18] sm:$0x77] }
   0x5   :  { %v40_v17 = vsub.s32 4, %v242_v3  ;;  %v44_v18 = vsub.s32 5, %v242_v3  ;;  %v140_v20 = vcombine.high %v273_v12, %v273_v12  ;;  %v48_v27 = vsub.s32 6, %v242_v3  ;;  %v15_v39 = vld [vmem:[%s330_s0 + $0x8] sm:$0xff] }
   0x6   :  { %v25_v21 = vrot.slane %v14_v6, %v24_v13  ;;  %v29_v22 = vrot.slane %v14_v6, %v28_v14  ;;  %v33_v23 = vrot.slane %v14_v6, %v32_v15  ;;  %v37_v24 = vrot.slane %v14_v6, %v36_v16 }
   0x7   :  { %v41_v25 = vrot.slane %v14_v6, %v40_v17  ;;  %v45_v26 = vrot.slane %v14_v6, %v44_v18  ;;  %v52_v28 = vsub.s32 7, %v242_v3  ;;  %v49_v36 = vrot.slane %v14_v6, %v48_v27 }
   0x8   :  { %v114_v29 = vmul.f32 %v25_v21, %v16_v1  ;;  %v115_v30 = vmul.f32 %v106_v7, %v29_v22  ;;  %v116_v31 = vmul.f32 %v33_v23, %v247_v4  ;;  %v117_v32 = vmul.f32 %v107_v9, %v37_v24 }
   0x9   :  { %v118_v34 = vmul.f32 %v41_v25, %v18_v11  ;;  %v119_v35 = vmul.f32 %v108_v19, %v45_v26  ;;  %v53_v37 = vrot.slane %v14_v6, %v52_v28  ;;  %v109_v46 = vcombine.high %v19_v33, %v19_v33 }
   0xa   :  { %v146_v40 = vadd.f32 %v240_v2, %v114_v29  ;;  %v147_v41 = vadd.f32 %v259_v8, %v115_v30  ;;  %v148_v42 = vadd.f32 %v252_v5, %v116_v31  ;;  %v149_v43 = vadd.f32 %v265_v10, %v117_v32 }
   0xb   :  { %v150_v44 = vadd.f32 %v273_v12, %v118_v34  ;;  %v151_v45 = vadd.f32 %v140_v20, %v119_v35  ;;  %v120_v47 = vmul.f32 %v49_v36, %v19_v33  ;;  %v141_v50 = vcombine.high %v133_v38, %v133_v38 }
   0xc   :  { %v178_v48 = vcombine.low %v146_v40, %v147_v41  ;;  %v179_v49 = vcombine.low %v148_v42, %v149_v43  ;;  %v57_v51 = vrot.slane %v15_v39, %v24_v13  ;;  %v121_v53 = vmul.f32 %v109_v46, %v53_v37 }
   0xd   :  { %v180_v52 = vcombine.low %v150_v44, %v151_v45  ;;  %v152_v54 = vadd.f32 %v133_v38, %v120_v47  ;;  %v61_v55 = vrot.slane %v15_v39, %v28_v14  ;;  %v65_v57 = vrot.slane %v15_v39, %v32_v15 }
   0xe   :  { %194 = vst [vmem:[%s333_s3] sm:$0x77] %v178_v48  ;;  %195 = vst [vmem:[%s333_s3 + $0x8] sm:$0x77] %v179_v49  ;;  %v122_v56 = vmul.f32 %v57_v51, %v16_v1  ;;  %v69_v58 = vrot.slane %v15_v39, %v36_v16  ;;  %v73_v59 = vrot.slane %v15_v39, %v40_v17 }
   0xf   :  { %196 = vst [vmem:[%s333_s3 + $0x10] sm:$0x77] %v180_v52  ;;  %v153_v60 = vadd.f32 %v141_v50, %v121_v53  ;;  %v123_v61 = vmul.f32 %v106_v7, %v61_v55  ;;  %v77_v62 = vrot.slane %v15_v39, %v44_v18  ;;  %v81_v63 = vrot.slane %v15_v39, %v48_v27 }
  0x10   :  { %v154_v0 = vadd.f32 %v240_v2, %v122_v56  ;;  %v124_v3 = vmul.f32 %v65_v57, %v247_v4  ;;  %v125_v6 = vmul.f32 %v107_v9, %v69_v58  ;;  %v126_v13 = vmul.f32 %v73_v59, %v18_v11 }
  0x11   :  { %v181_v14 = vcombine.low %v152_v54, %v153_v60  ;;  %v155_v1 = vadd.f32 %v259_v8, %v123_v61  ;;  %v127_v15 = vmul.f32 %v108_v19, %v77_v62  ;;  %v85_v16 = vrot.slane %v15_v39, %v52_v28 }
  0x12   :  { %v156_v17 = vadd.f32 %v252_v5, %v124_v3  ;;  %v157_v21 = vadd.f32 %v265_v10, %v125_v6  ;;  %v158_v22 = vadd.f32 %v273_v12, %v126_v13  ;;  %v128_v7 = vmul.f32 %v81_v63, %v19_v33 }
  0x13   :  { %197 = vst [vmem:[%s333_s3 + $0x18] sm:$0x77] %v181_v14  ;;  %v182_v2 = vcombine.low %v154_v0, %v155_v1  ;;  %v159_v4 = vadd.f32 %v140_v20, %v127_v15  ;;  %v129_v9 = vmul.f32 %v109_v46, %v85_v16 }
  0x14   :  { %v183_v11 = vcombine.low %v156_v17, %v157_v21  ;;  %v160_v18 = vadd.f32 %v133_v38, %v128_v7 }
  0x15   :  { %198 = vst [vmem:[%s333_s3 + $0x20] sm:$0x77] %v182_v2  ;;  %v184_v8 = vcombine.low %v158_v22, %v159_v4  ;;  %v161_v5 = vadd.f32 %v141_v50, %v129_v9 }
  0x16   :  { %199 = vst [vmem:[%s333_s3 + $0x28] sm:$0x77] %v183_v11 }
  0x17   :  { %200 = vst [vmem:[%s333_s3 + $0x30] sm:$0x77] %v184_v8  ;;  %v185_v10 = vcombine.low %v160_v18, %v161_v5 }
  0x19   :  { %201 = vst [vmem:[%s333_s3 + $0x38] sm:$0x77] %v185_v10 }

</bundles_post_ra>
